<compile_context>
chip_gen: v6e
topology: v6e:2x2x1
jax: 0.10.0
libtpu: 0.0.40
codegen_flags: <defaults>
</compile_context>

<pallas_src>
import functools

import jax
import jax.numpy as jnp
from jax.experimental import pallas as pl
from jax.experimental.pallas import tpu as pltpu


def _upwind_weights(dz):
    """Replicates the weight formulas of the two PyTorch sub-modules (uniform dz)."""
    # Order2_Diff1_Unstructure_Perioid_forward: stencil on [u[i-2], u[i-1], u[i]]
    dz_m1 = dz_m2 = dz
    f = -dz_m1 * (dz_m1 + dz_m2) / dz_m2
    wf = (
        -1.0 * f / (dz_m2 + dz_m1) ** 2,
        1.0 * f / dz_m1 ** 2,
        1.0 * f / (dz_m2 + dz_m1) ** 2 - 1.0 * f / dz_m1 ** 2,
    )
    # Order2_Diff1_Unstructure_Perioid_backward: stencil on [u[i], u[i+1], u[i+2]]
    dz_p1 = dz_p2 = dz
    b = dz_p1 * (dz_p1 + dz_p2) / dz_p2
    wb = (
        1.0 * b / (dz_p1 + dz_p2) ** 2 - 1.0 * b / dz_p1 ** 2,
        1.0 * b / dz_p1 ** 2,
        -1.0 * b / (dz_p1 + dz_p2) ** 2,
    )
    return tuple(float(w) for w in wf), tuple(float(w) for w in wb)


def _upwind_diff1_x_kernel(u_ref, s_ref, o_ref, *, wf, wb, len_x):
    u = u_ref[...]                                    # (len_x, tile_y) f32 in VMEM
    s = s_ref[...]
    # Circular shifts along X (axis 0 = sublanes) on the XLU.
    u_m1 = pltpu.roll(u, shift=1, axis=0)             # u[(i-1) % len_x]
    u_m2 = pltpu.roll(u, shift=2, axis=0)             # u[(i-2) % len_x]
    u_p1 = pltpu.roll(u, shift=len_x - 1, axis=0)     # u[(i+1) % len_x]
    u_p2 = pltpu.roll(u, shift=len_x - 2, axis=0)     # u[(i+2) % len_x]
    fwd = wf[0] * u_m2 + wf[1] * u_m1 + wf[2] * u     # positive-wind stencil
    bwd = wb[0] * u + wb[1] * u_p1 + wb[2] * u_p2     # negative-wind stencil
    o_ref[...] = jnp.where(s >= 0.0, fwd, bwd)


def _pick_tile_y(len_x, len_y, *, max_tile=512, vmem_budget_bytes=8 * 1024 * 1024):
    """Largest lane tile (multiple of 128, dividing len_y) within the VMEM budget."""
    if len_y % 128 != 0:
        # Full-extent last dim is always a legal block shape.
        return len_y
    # 3 f32 arrays (u, u_sign, out) x 2 pipeline buffers per tile column.
    bytes_per_lane = 3 * 2 * 4 * len_x
    fit = max(128, (vmem_budget_bytes // bytes_per_lane) // 128 * 128)
    cap = min(max_tile, fit, len_y)
    for t in range(cap, 127, -128):
        if len_y % t == 0:
            return t
    return len_y


def order2_diff1_upwind_x(u, u_sign, z_vector):
    """Upwind periodic first derivative along X. u, u_sign: (V, len_x, len_y)."""
    assert u.ndim == 3, "expected (variable, x, y)"
    V, len_x, len_y = u.shape
    assert u_sign.shape == u.shape
    assert z_vector.shape[0] == len_x
    assert len_x >= 3

    dz = float(z_vector[1]) - float(z_vector[0])
    wf, wb = _upwind_weights(dz)

    # TODO(synk): if len_x ever grows so large that even a 128-lane tile blows
    # the VMEM budget, add an X-tiled path with explicit 2-row periodic halos.
    tile_y = _pick_tile_y(len_x, len_y)
    grid = (V, len_y // tile_y)

    kernel = functools.partial(_upwind_diff1_x_kernel, wf=wf, wb=wb, len_x=len_x)
    spec = pl.BlockSpec((None, len_x, tile_y), lambda v, j: (v, 0, j))

    out = pl.pallas_call(
        kernel,
        out_shape=jax.ShapeDtypeStruct((V, len_x, len_y), u.dtype),
        grid=grid,
        in_specs=[spec, spec],
        out_specs=spec,
        compiler_params=pltpu.CompilerParams(
            dimension_semantics=("parallel", "parallel"),
        ),
    )(u, u_sign)
    return out


def _reference(u, u_sign, z_vector):
    """Pure-JAX replica of the PyTorch module (total_dim=2, diff_dim=1)."""
    dz = float(z_vector[1]) - float(z_vector[0])
    wf, wb = _upwind_weights(dz)
    u_m1 = jnp.roll(u, 1, axis=1)
    u_m2 = jnp.roll(u, 2, axis=1)
    u_p1 = jnp.roll(u, -1, axis=1)
    u_p2 = jnp.roll(u, -2, axis=1)
    fwd = wf[0] * u_m2 + wf[1] * u_m1 + wf[2] * u
    bwd = wb[0] * u + wb[1] * u_p1 + wb[2] * u_p2
    return (u_sign >= 0.0) * fwd + (u_sign < 0.0) * bwd


if __name__ == "__main__":
    key = jax.random.PRNGKey(0)
    k1, k2, k3 = jax.random.split(key, 3)

    # TODO(synk): only the total_dim=2 / diff_dim=1 (diff along X) configuration
    # is implemented; diff along the lane axis and the float64 path are not.
    V, len_x, len_y = 2, 16, 1024
    dz = 0.1
    z_vec = jnp.arange(len_x, dtype=jnp.float32) * dz

    u = jax.random.normal(k1, (V, len_x, len_y), dtype=jnp.float32)
    u_sign = jax.random.normal(k2, (V, len_x, len_y), dtype=jnp.float32)

    out = jax.block_until_ready(order2_diff1_upwind_x(u, u_sign, z_vec))
    ref = _reference(u, u_sign, z_vec)
    assert out.shape == u.shape
    assert jnp.allclose(out, ref, atol=1e-4, rtol=1e-4)

    # Second case: len_y not a multiple of 128 exercises the full-extent
    # fallback block path.
    u2 = jax.random.normal(k3, (1, len_x, 200), dtype=jnp.float32)
    s2 = -u2
    out2 = jax.block_until_ready(order2_diff1_upwind_x(u2, s2, z_vec))
    ref2 = _reference(u2, s2, z_vec)
    assert jnp.allclose(out2, ref2, atol=1e-4, rtol=1e-4)

    print("KERNEL_OK")
</pallas_src>

<mosaic_0001>
module attributes {stable_mosaic.version = 11 : i64} {
  func.func @_upwind_diff1_x_kernel(%arg0: i32, %arg1: i32, %arg2: memref<1x16x512xf32, #tpu.memory_space<vmem>>, %arg3: memref<1x16x512xf32, #tpu.memory_space<vmem>>, %arg4: memref<1x16x512xf32, #tpu.memory_space<vmem>>) attributes {dimension_semantics = [#tpu.dimension_semantics<parallel>, #tpu.dimension_semantics<parallel>], iteration_bounds = array<i64: 2, 2>, scalar_prefetch = 0 : i64, scratch_operands = 0 : i64, tpu.core_type = #tpu.core_type<tc>, window_params = [{transform_indices = @transform_0, window_bounds = array<i64: 1, 16, 512>}, {transform_indices = @transform_1, window_bounds = array<i64: 1, 16, 512>}, {transform_indices = @transform_2, window_bounds = array<i64: 1, 16, 512>}]} {
    %c0 = arith.constant 0 : index
    %c0_0 = arith.constant 0 : index
    %c0_1 = arith.constant 0 : index
    %0 = vector.load %arg2[%c0, %c0_0, %c0_1] : memref<1x16x512xf32, #tpu.memory_space<vmem>>, vector<1x16x512xf32>
    %1 = vector.shape_cast %0 : vector<1x16x512xf32> to vector<16x512xf32>
    %c0_2 = arith.constant 0 : index
    %c0_3 = arith.constant 0 : index
    %c0_4 = arith.constant 0 : index
    %2 = vector.load %arg3[%c0_2, %c0_3, %c0_4] : memref<1x16x512xf32, #tpu.memory_space<vmem>>, vector<1x16x512xf32>
    %3 = vector.shape_cast %2 : vector<1x16x512xf32> to vector<16x512xf32>
    %c1_i32 = arith.constant 1 : i32
    %4 = tpu.dynamic_rotate %1 by %c1_i32 dim 0 : vector<16x512xf32>, i32 -> vector<16x512xf32>
    %c2_i32 = arith.constant 2 : i32
    %5 = tpu.dynamic_rotate %1 by %c2_i32 dim 0 : vector<16x512xf32>, i32 -> vector<16x512xf32>
    %c15_i32 = arith.constant 15 : i32
    %6 = tpu.dynamic_rotate %1 by %c15_i32 dim 0 : vector<16x512xf32>, i32 -> vector<16x512xf32>
    %c14_i32 = arith.constant 14 : i32
    %7 = tpu.dynamic_rotate %1 by %c14_i32 dim 0 : vector<16x512xf32>, i32 -> vector<16x512xf32>
    %cst = arith.constant 5.000000e+00 : f32
    %8 = vector.broadcast %cst : f32 to vector<16x512xf32>
    %9 = arith.mulf %8, %5 : vector<16x512xf32>
    %cst_5 = arith.constant -2.000000e+01 : f32
    %10 = vector.broadcast %cst_5 : f32 to vector<16x512xf32>
    %11 = arith.mulf %10, %4 : vector<16x512xf32>
    %12 = arith.addf %9, %11 : vector<16x512xf32>
    %cst_6 = arith.constant 1.500000e+01 : f32
    %13 = vector.broadcast %cst_6 : f32 to vector<16x512xf32>
    %14 = arith.mulf %13, %1 : vector<16x512xf32>
    %15 = arith.addf %12, %14 : vector<16x512xf32>
    %cst_7 = arith.constant -1.500000e+01 : f32
    %16 = vector.broadcast %cst_7 : f32 to vector<16x512xf32>
    %17 = arith.mulf %16, %1 : vector<16x512xf32>
    %cst_8 = arith.constant 2.000000e+01 : f32
    %18 = vector.broadcast %cst_8 : f32 to vector<16x512xf32>
    %19 = arith.mulf %18, %6 : vector<16x512xf32>
    %20 = arith.addf %17, %19 : vector<16x512xf32>
    %cst_9 = arith.constant -5.000000e+00 : f32
    %21 = vector.broadcast %cst_9 : f32 to vector<16x512xf32>
    %22 = arith.mulf %21, %7 : vector<16x512xf32>
    %23 = arith.addf %20, %22 : vector<16x512xf32>
    %cst_10 = arith.constant 0.000000e+00 : f32
    %24 = vector.broadcast %cst_10 : f32 to vector<16x512xf32>
    %25 = arith.cmpf oge, %3, %24 : vector<16x512xf32>
    %26 = arith.select %25, %15, %23 : vector<16x512xi1>, vector<16x512xf32>
    %c0_11 = arith.constant 0 : index
    %c0_12 = arith.constant 0 : index
    %c0_13 = arith.constant 0 : index
    %27 = vector.load %arg4[%c0_11, %c0_12, %c0_13] : memref<1x16x512xf32, #tpu.memory_space<vmem>>, vector<1x16x512xf32>
    %28 = vector.shape_cast %27 : vector<1x16x512xf32> to vector<16x512xf32>
    %29 = vector.shape_cast %26 : vector<16x512xf32> to vector<1x16x512xf32>
    tpu.vector_store %arg4[%c0_11, %c0_12, %c0_13], %29 {strides = array<i32>} : memref<1x16x512xf32, #tpu.memory_space<vmem>>, vector<1x16x512xf32>,
    return
  }
  func.func @transform_0(%arg0: i32, %arg1: i32) -> (i32, i32, i32) {
    %c0_i32 = arith.constant 0 : i32
    %c0_i32_0 = arith.constant 0 : i32
    return %arg0, %c0_i32, %arg1 : i32, i32, i32
  }
  func.func @transform_1(%arg0: i32, %arg1: i32) -> (i32, i32, i32) {
    %c0_i32 = arith.constant 0 : i32
    %c0_i32_0 = arith.constant 0 : i32
    return %arg0, %c0_i32, %arg1 : i32, i32, i32
  }
  func.func @transform_2(%arg0: i32, %arg1: i32) -> (i32, i32, i32) {
    %c0_i32 = arith.constant 0 : i32
    %c0_i32_0 = arith.constant 0 : i32
    return %arg0, %c0_i32, %arg1 : i32, i32, i32
  }
}

</mosaic_0001>

<bundles_post_ra>
// kernel: tpu_custom_call.1
= control target key start
LH: loop header
LB: loop body
LE: loop exit
PB: predicated region body
PF: predicated region fallthrough
CT: control target
= control target key end

     0   :  { %s1349_s0 = inlined_call_operand.hbm [shape: f32[2,16,1024], index: 0, kind: input, shape index: {}]   ;;  %s1350_s1 = inlined_call_operand.hbm [shape: f32[2,16,1024], index: 1, kind: input, shape index: {}]   ;;  %s1351_s2 = inlined_call_operand.hbm [shape: f32[2,16,1024], index: 2, kind: output, shape index: {}]  }
   0x1   :  { %1356 = sst [smem:[#allocation14_spill]] %s1349_s0 }
   0x2   :  { %7 = vsyncpa [#allocation3], 0 }
   0x3   :  { %9 = vsyncpa [#allocation3 + $0x1], 0 }
   0x4   :  { %10 = vsyncpa [#allocation6], 0 }
   0x5   :  { %12 = vsyncpa [#allocation6 + $0x1], 0 }
   0x6   :  { %13 = vsyncpa [#allocation4], 0 }
   0x7   :  { %15 = vsyncpa [#allocation4 + $0x1], 0  ;;  %s842_s9 = smov 0   ;;  %s844_s10 = smov 0  }
   0x8   :  { %s846_s11 = smov 0   ;;  %s848_s12 = smov 0  }
   0x9   :  { %s850_s13 = smov 0   ;;  %s852_s14 = smov 0  }
   0xa   :  { %s854_s15 = smov 0   ;;  %s856_s16 = smov 0  }
   0xb LB: > { %1357 = sst [smem:[#allocation11_spill]] %s812_s15  ;;  %s549_s17 = sadd.s32 4294967295, %s816_s16   ;;  %s816_s16 = sphi %s856_s16, %s21_s16   ;;  %s812_s15 = sphi %s854_s15, %s1370_s15   ;;  %s808_s14 = sphi %s852_s14, %s1375_s14   ;;  %s804_s13 = sphi %s850_s13, %s1368_s13   ;;  %s800_s12 = sphi %s848_s12, %s1374_s12   ;;  %s796_s11 = sphi %s846_s11, %s1373_s11   ;;  %s792_s10 = sphi %s844_s10, %s1372_s10   ;;  %s788_s9 = sphi %s842_s9, %s1371_s9  }
   0xc   : > { %s550_s18 = sadd.s32 4294967294, %s816_s16   ;;  %s30_s19 = sadd.s32 1, %s808_s14 }
   0xd   : > { %s33_s20 = sadd.s32 1, %s812_s15  ;;  %p31_p0 = scmp.ge.s32.totalorder %s30_s19, 2 }
   0xe   : > { %s42_s21 = sadd.s32 1, %s796_s11  ;;  %p49_p1 = scmp.ne.s32.totalorder %s796_s11, %s792_s10 }
   0xf   : > { %p50_p2 = scmp.eq.s32.totalorder %s816_s16, 0  ;;  %s1377_s19 = smov (%p31_p0, %s30_s19), 0 }
  0x10   : > { %1358 = sst [smem:[#allocation12_spill]] %s1377_s19  ;;  %s1379_s20 = smov (!%p31_p0, %s33_s20), %s812_s15 }
  0x11   : > { %s38_s22 = ssub.s32 %s808_s14, %s1377_s19  ;;  %p895_p3 = por %p50_p2, %p49_p1 }
  0x12   : > { %p35_p4 = scmp.ge.s32.totalorder %s1379_s20, 2  ;;  %p55_p5 = scmp.ne.s32.totalorder %s792_s10, %s788_s9 }
  0x13   : > { %p56_p6 = scmp.eq.s32.totalorder %s549_s17, 0  ;;  %p109_p7 = scmp.eq.s32.totalorder %s549_s17, 3 }
  0x14   : > { %s1381_s20 = smov (%p35_p4, %s1379_s20), 0  ;;  %p115_p10 = scmp.eq.s32.totalorder %s550_s18, 3 }
  0x15   : > { %1360 = sst [smem:[#allocation13_spill]] %s1381_s20  ;;  %p903_p8 = por %p56_p6, %p55_p5 }
  0x16   : > { %p907_p9 = por %p109_p7, %p49_p1  ;;  %s37_s26 = ssub.s32 %s812_s15, %s1381_s20 }
  0x17   : > { %s39_s27 = sor.u32 %s38_s22, %s37_s26  ;;  %p913_p12 = por %p115_p10, %p55_p5 }
  0x18   : > { %p40_p11 = scmp.eq.s32.totalorder %s39_s27, 0  ;;  %p588_p13 = scmp.lt.s32.totalorder %s816_s16, 4 }
  0x19   : > { %s919_s29 = sand.u32 1, %s796_s11   ;;  %s554_s4 = sshll.u32 %s808_s14, 2 }
  0x1a   : > { %s922_s30 = scalar_select %p40_p11, %s796_s11, %s42_s21  }
  0x1b   : > { %s1352_s3 = sshll.u32 %s919_s29, 6  ;;  %s555_s5 = sshll.u32 %s812_s15, 4 }
  0x1c   : > { %s139_s6 = scalar_lea.vmem [#allocation2], %s1352_s3  ;;  %s929_s8 = sadd.s32 %s555_s5, %s554_s4 }
  0x1d   : > { %s148_s7 = sshll.u32 %s139_s6, 4  ;;  %s556_s17 = sshll.u32 %s929_s8, 7  ;;  %s149_s7 = int_to_ptr.vmem [resolvable:$true] %s148_s7 }
  0x1e   : > { %p934_p0 = pnand %p588_p13, %p895_p3  ;;  %s1365_s0 = sld [smem:[#allocation14_spill]] }
  0x1f   : > { %p561_p1 = scmp.ge.s32.totalorder %s816_s16, 1  ;;  %s136_s27 = scalar_lea.sflag [#allocation3], %s919_s29 }
  0x20   : > { %p662_p2 = pneg %p934_p0  ;;  %s673_s4 = scalar_lea.vmem %s149_s7, 1024 }
  0x21   : > { %p674_p4 = scmp.ne.s32.totalorder %s149_s7, %s673_s4  ;;  %s818_s23 = smov [#allocation2]  }
  0x22   : > { %s678_s5 = sshll.u32 %s818_s23, 4  ;;  %s679_s5 = int_to_ptr.vmem [resolvable:$false] %s678_s5 }
  0x23   : > { %p676_p5 = pnand %p674_p4, %p662_p2  ;;  %s680_s6 = scalar_lea.vmem %s679_s5, 2048 }
  0x24   : > { %s147_s21 = scalar_lea.hbm %s1365_s0, %s556_s17  ;;  %p681_p3 = scmp.lt.s32.totalorder %s149_s7, %s679_s5 }
  0x25   : > { %p677_p6 = pneg %p676_p5  ;;  %p682_p7 = scmp.lt.s32.totalorder %s680_s6, %s673_s4 }
  0x27   : > { %p683_p10 = por %p682_p7, %p681_p3 }
  0x29   : > { %p684_p11 = pnand %p683_p10, %p677_p6 }
  0x2b   : > { %687 = shalt.err (!%p684_p11)
}
  0x2c   : > { %s819_s8 = smov 1024   ;;  %s820_s22 = smov 512  }
  0x2d   : > { %s821_s26 = smov 32   ;;  %p179_p13 = scmp.lt.s32.totalorder %s816_s16, 5 }
  0x2e   : > { %580 = dma.hbm_to_vmem [thread:$0]  (!%p934_p0), %s147_s21, 1024, %s149_s7, %s136_s27, %s819_s8, %s820_s22, %s821_s26  }
  0x2f   : > { %s170_s5 = scalar_lea.hbm %s1350_s1, %s556_s17  ;;  %p956_p4 = pnand %p561_p1, %p179_p13 }
  0x30   : > { %s1367_s6 = sshll.u32 %s919_s29, 6  ;;  %s159_s19 = scalar_lea.sflag [#allocation6], %s919_s29 }
  0x31   : > { %s162_s0 = scalar_lea.vmem [#allocation5], %s1367_s6  ;;  %s822_s7 = smov [#allocation5]  }
  0x32   : > { %s171_s20 = sshll.u32 %s162_s0, 4  ;;  %s706_s21 = sshll.u32 %s822_s7, 4  ;;  %s172_s20 = int_to_ptr.vmem [resolvable:$true] %s171_s20  ;;  %s707_s21 = int_to_ptr.vmem [resolvable:$false] %s706_s21 }
  0x33   : > { %s701_s15 = scalar_lea.vmem %s172_s20, 1024  ;;  %s708_s3 = scalar_lea.vmem %s707_s21, 2048 }
  0x34   : > { %p702_p5 = scmp.ne.s32.totalorder %s172_s20, %s701_s15  ;;  %p709_p7 = scmp.lt.s32.totalorder %s172_s20, %s707_s21 }
  0x35   : > { %p710_p1 = scmp.lt.s32.totalorder %s708_s3, %s701_s15 }
  0x36   : > { %p704_p6 = pnand %p702_p5, %p662_p2 }
  0x37   : > { %p711_p10 = por %p710_p1, %p709_p7 }
  0x38   : > { %p705_p3 = pneg %p704_p6 }
  0x3a   : > { %p712_p11 = pnand %p711_p10, %p705_p3 }
  0x3c   : > { %715 = shalt.err (!%p712_p11)
}
  0x3d   : > { %583 = dma.hbm_to_vmem [thread:$0]  (!%p934_p0), %s170_s5, 1024, %s172_s20, %s159_s19, %s819_s8, %s820_s22, %s821_s26  }
  0x3e   : > { %183 = sbr.rel (%p956_p4) target bundleno = 132 (0x84), region = 28  ;;  %s971_s0 = sand.u32 (!%p956_p4), 1, %s792_s10  }
  0x3f   : > { %s974_s29 = sshll.u32 (!%p956_p4), %s971_s0, 6  ;;  %s186_s17 = scalar_lea.sflag (!%p956_p4), [#allocation3], %s971_s0 }
  0x40   : > { %s978_s15 = scalar_lea.vmem (!%p956_p4), [#allocation2], %s974_s29 }
  0x43   : > { %775 = dma.done.wait (%p903_p8), %s186_s17, 1024  }
  0x44   : > { %777 = vsyncadd (%p903_p8), %s186_s17, 4294966272  ;;  %s195_s19 = scalar_lea.sflag [#allocation6], %s971_s0  ;;  %s986_s20 = scalar_lea.vmem [#allocation5], %s974_s29 }
  0x45   : > { %779 = dma.done.wait (%p903_p8), %s195_s19, 1024  }
  0x46   : > { %781 = vsyncadd (%p903_p8), %s195_s19, 4294966272  ;;  %v251_v0 = vlaneseq  ;;  %v995_v2 = vld [vmem:[%s978_s15] sm:$0xff]  ;;  %v1014_v13 = vld [vmem:[%s978_s15 + $0x8] sm:$0xff]  ;;  %s1088_s24 = scalar_lea.vmem [#allocation7], %s974_s29  ;;  %s566_s18 = sshll.u32 %s800_s12, 2 }
  0x47   : > { %v998_v3 = vld [vmem:[%s978_s15 + $0x20] sm:$0xff]  ;;  %v243_v4 = vrot.slane %v995_v2, 7  ;;  %v262_v6 = vrot.slane %v995_v2, 6  ;;  %v279_v9 = vrot.slane %v995_v2, 1  ;;  %v296_v11 = vrot.slane %v995_v2, 2  ;;  %v1031_v18 = vld [vmem:[%s978_s15 + $0x28] sm:$0xff] }
  0x48   : > { %v992_v1 = vshrl.u32 %v251_v0, 7  ;;  %v247_v5 = vrot.slane %v998_v3, 7  ;;  %v266_v7 = vrot.slane %v998_v3, 6  ;;  %v235_v8 = vld [vmem:[%s986_s20] sm:$0xff]  ;;  %v283_v10 = vrot.slane %v998_v3, 1  ;;  %v236_v35 = vld [vmem:[%s986_s20 + $0x8] sm:$0xff] }
  0x49   : > { %v300_v12 = vrot.slane %v998_v3, 2  ;;  %v337_v16 = vmul.f32 15.0, %v995_v2  ;;  %v353_v17 = vmul.f32 -15.0, %v995_v2  ;;  %vm393_vm4 = vcmp.ge.f32.partialorder %v235_v8, 0.0  ;;  %v1073_v43 = vld [vmem:[%s978_s15 + $0x10] sm:$0xff]  ;;  %v1107_v8 = vld [vmem:[%s978_s15 + $0x18] sm:$0xff] }
  0x4a   : > { %vm253_vm0 = vcmp.lt.s32.totalorder %v992_v1, 1  ;;  %vm270_vm1 = vcmp.lt.s32.totalorder %v992_v1, 2  ;;  %vm287_vm2 = vcmp.lt.s32.totalorder %v992_v1, 7  ;;  %vm304_vm3 = vcmp.lt.s32.totalorder %v992_v1, 6  ;;  %v1076_v44 = vld [vmem:[%s978_s15 + $0x30] sm:$0xff]  ;;  %s567_s27 = sshll.u32 %s804_s13, 4 }
  0x4b   : > { %v258_v14 = vsel %vm253_vm0, %v247_v5, %v243_v4  ;;  %v275_v15 = vsel %vm270_vm1, %v266_v7, %v262_v6  ;;  %v288_v19 = vsel %vm287_vm2, %v279_v9, %v283_v10  ;;  %v305_v20 = vsel %vm304_vm3, %v296_v11, %v300_v12  ;;  %v237_v61 = vld [vmem:[%s986_s20 + $0x10] sm:$0xff]  ;;  %s430_s12 = sadd.s32 %s567_s27, %s566_s18  ;;  %s433_s13 = sshll.u32 %s1088_s24, 4  ;;  %s1289_s13 = int_to_ptr.vmem [resolvable:$true] %s433_s13 }
  0x4c   : > { %v313_v21 = vmul.f32 5.0, %v275_v15  ;;  %v321_v22 = vmul.f32 -20.0, %v258_v14  ;;  %v361_v23 = vmul.f32 20.0, %v288_v19  ;;  %v377_v24 = vmul.f32 -5.0, %v305_v20  ;;  %v1123_v19 = vld [vmem:[%s978_s15 + $0x38] sm:$0xff]  ;;  %s568_s8 = sshll.u32 %s430_s12, 7 }
  0x4d   : > { %v244_v25 = vrot.slane %v1014_v13, 7  ;;  %v248_v27 = vrot.slane %v1031_v18, 7  ;;  %v263_v28 = vrot.slane %v1014_v13, 6  ;;  %v267_v29 = vrot.slane %v1031_v18, 6  ;;  %s1295_s23 = scalar_lea.hbm %s1351_s2, %s568_s8  ;;  %s418_s5 = scalar_lea.sflag [#allocation4], %s971_s0 }
  0x4e   : > { %v329_v26 = vadd.f32 %v321_v22, %v313_v21  ;;  %v369_v30 = vadd.f32 %v361_v23, %v353_v17  ;;  %v280_v31 = vrot.slane %v1014_v13, 1  ;;  %v284_v32 = vrot.slane %v1031_v18, 1  ;;  %s716_s4 = scalar_lea.vmem %s1289_s13, 1024  ;;  %s823_s6 = smov [#allocation7]  }
  0x4f   : > { %v297_v33 = vrot.slane %v1014_v13, 2  ;;  %v259_v36 = vsel %vm253_vm0, %v248_v27, %v244_v25  ;;  %v276_v37 = vsel %vm270_vm1, %v267_v29, %v263_v28  ;;  %v301_v38 = vrot.slane %v1031_v18, 2  ;;  %p717_p8 = scmp.ne.s32.totalorder %s1289_s13, %s716_s4  ;;  %s720_s7 = sshll.u32 %s823_s6, 4  ;;  %s721_s7 = int_to_ptr.vmem [resolvable:$false] %s720_s7 }
  0x50   : > { %v345_v34 = vadd.f32 %v337_v16, %v329_v26  ;;  %v385_v39 = vadd.f32 %v377_v24, %v369_v30  ;;  %v289_v40 = vsel %vm287_vm2, %v280_v31, %v284_v32  ;;  %v314_v41 = vmul.f32 5.0, %v276_v37  ;;  %s722_s21 = scalar_lea.vmem %s721_s7, 2048  ;;  %p723_p13 = scmp.lt.s32.totalorder %s1289_s13, %s721_s7 }
  0x51   : > { %v322_v42 = vmul.f32 -20.0, %v259_v36  ;;  %v306_v45 = vsel %vm304_vm3, %v297_v33, %v301_v38  ;;  %v338_v46 = vmul.f32 15.0, %v1014_v13  ;;  %v354_v47 = vmul.f32 -15.0, %v1014_v13  ;;  %p718_p0 = pnand %p717_p8, %p907_p9  ;;  %p724_p4 = scmp.lt.s32.totalorder %s722_s21, %s716_s4 }
  0x52   : > { %v362_v48 = vmul.f32 20.0, %v289_v40  ;;  %v401_v49 = vsel %vm393_vm4, %v345_v34, %v385_v39  ;;  %v378_v51 = vmul.f32 -5.0, %v306_v45  ;;  %vm394_vm5 = vcmp.ge.f32.partialorder %v236_v35, 0.0 }
  0x53   : > { %v330_v50 = vadd.f32 %v322_v42, %v314_v41  ;;  %409 = vst [vmem:[%s1088_s24] sm:$0xff] %v401_v49  ;;  %v245_v53 = vrot.slane %v1073_v43, 7  ;;  %v249_v54 = vrot.slane %v1076_v44, 7  ;;  %v264_v55 = vrot.slane %v1073_v43, 6  ;;  %p719_p2 = pneg %p718_p0  ;;  %p725_p5 = por %p724_p4, %p723_p13 }
  0x54   : > { %v370_v52 = vadd.f32 %v362_v48, %v354_v47  ;;  %v268_v57 = vrot.slane %v1076_v44, 6  ;;  %v281_v58 = vrot.slane %v1073_v43, 1  ;;  %v285_v59 = vrot.slane %v1076_v44, 1 }
  0x55   : > { %v346_v56 = vadd.f32 %v338_v46, %v330_v50  ;;  %v260_v62 = vsel %vm253_vm0, %v249_v54, %v245_v53  ;;  %v298_v63 = vrot.slane %v1073_v43, 2  ;;  %v302_v0 = vrot.slane %v1076_v44, 2  ;;  %v238_v46 = vld [vmem:[%s986_s20 + $0x18] sm:$0xff]  ;;  %p726_p6 = pnand %p725_p5, %p719_p2 }
  0x56   : > { %v386_v60 = vadd.f32 %v378_v51, %v370_v52  ;;  %v277_v14 = vsel %vm270_vm1, %v268_v57, %v264_v55  ;;  %v290_v15 = vsel %vm287_vm2, %v281_v58, %v285_v59  ;;  %v323_v16 = vmul.f32 -20.0, %v260_v62 }
  0x57   : > { %v339_v17 = vmul.f32 15.0, %v1073_v43  ;;  %v307_v21 = vsel %vm304_vm3, %v298_v63, %v302_v0  ;;  %v315_v22 = vmul.f32 5.0, %v277_v14  ;;  %v355_v23 = vmul.f32 -15.0, %v1073_v43 }
  0x58   : > { %v402_v20 = vsel %vm394_vm5, %v346_v56, %v386_v60  ;;  %v363_v24 = vmul.f32 20.0, %v290_v15  ;;  %v379_v26 = vmul.f32 -5.0, %v307_v21  ;;  %vm395_vm6 = vcmp.ge.f32.partialorder %v237_v61, 0.0 }
  0x59   : > { %410 = vst [vmem:[%s1088_s24 + $0x8] sm:$0xff] %v402_v20  ;;  %v246_v30 = vrot.slane %v1107_v8, 7  ;;  %v331_v34 = vadd.f32 %v323_v16, %v315_v22  ;;  %v250_v35 = vrot.slane %v1123_v19, 7  ;;  %v265_v36 = vrot.slane %v1107_v8, 6  ;;  %v239_v22 = vld [vmem:[%s986_s20 + $0x20] sm:$0xff] }
  0x5a   : > { %v269_v37 = vrot.slane %v1123_v19, 6  ;;  %v371_v39 = vadd.f32 %v363_v24, %v355_v23  ;;  %v282_v40 = vrot.slane %v1107_v8, 1  ;;  %v286_v41 = vrot.slane %v1123_v19, 1 }
  0x5b   : > { %v299_v42 = vrot.slane %v1107_v8, 2  ;;  %v347_v45 = vadd.f32 %v339_v17, %v331_v34  ;;  %v261_v47 = vsel %vm253_vm0, %v250_v35, %v246_v30  ;;  %v303_v49 = vrot.slane %v1123_v19, 2 }
  0x5c   : > { %v278_v48 = vsel %vm270_vm1, %v269_v37, %v265_v36  ;;  %v387_v50 = vadd.f32 %v379_v26, %v371_v39  ;;  %v291_v51 = vsel %vm287_vm2, %v282_v40, %v286_v41  ;;  %v324_v56 = vmul.f32 -20.0, %v261_v47 }
  0x5d   : > { %v316_v52 = vmul.f32 5.0, %v278_v48  ;;  %v308_v60 = vsel %vm304_vm3, %v299_v42, %v303_v49  ;;  %v340_v62 = vmul.f32 15.0, %v1107_v8  ;;  %v356_v14 = vmul.f32 -15.0, %v1107_v8 }
  0x5e   : > { %v364_v15 = vmul.f32 20.0, %v291_v51  ;;  %v403_v16 = vsel %vm395_vm6, %v347_v45, %v387_v50  ;;  %v380_v20 = vmul.f32 -5.0, %v308_v60  ;;  %vm396_vm7 = vcmp.ge.f32.partialorder %v238_v46, 0.0 }
  0x5f   : > { %v332_v17 = vadd.f32 %v324_v56, %v316_v52  ;;  %411 = vst [vmem:[%s1088_s24 + $0x10] sm:$0xff] %v403_v16  ;;  %v254_v23 = vsel %vm253_vm0, %v243_v4, %v247_v5  ;;  %v271_v61 = vsel %vm270_vm1, %v262_v6, %v266_v7  ;;  %v292_v24 = vsel %vm287_vm2, %v283_v10, %v279_v9  ;;  %v241_v56 = vld [vmem:[%s986_s20 + $0x30] sm:$0xff] }
  0x60   : > { %v372_v21 = vadd.f32 %v364_v15, %v356_v14  ;;  %v309_v4 = vsel %vm304_vm3, %v300_v12, %v296_v11  ;;  %v317_v5 = vmul.f32 5.0, %v271_v61  ;;  %v325_v34 = vmul.f32 -20.0, %v254_v23  ;;  %v240_v11 = vld [vmem:[%s986_s20 + $0x28] sm:$0xff] }
  0x61   : > { %v348_v26 = vadd.f32 %v340_v62, %v332_v17  ;;  %v341_v7 = vmul.f32 15.0, %v998_v3  ;;  %v357_v39 = vmul.f32 -15.0, %v998_v3  ;;  %v365_v45 = vmul.f32 20.0, %v292_v24 }
  0x62   : > { %v388_v6 = vadd.f32 %v380_v20, %v372_v21  ;;  %v333_v47 = vadd.f32 %v325_v34, %v317_v5  ;;  %v381_v48 = vmul.f32 -5.0, %v309_v4  ;;  %vm397_vm8 = vcmp.ge.f32.partialorder %v239_v22, 0.0 }
  0x63   : > { %v255_v2 = vsel %vm253_vm0, %v244_v25, %v248_v27  ;;  %v373_v10 = vadd.f32 %v365_v45, %v357_v39  ;;  %v272_v3 = vsel %vm270_vm1, %v263_v28, %v267_v29  ;;  %v293_v12 = vsel %vm287_vm2, %v284_v32, %v280_v31 }
  0x64   : > { %v404_v9 = vsel %vm396_vm7, %v348_v26, %v388_v6  ;;  %v349_v25 = vadd.f32 %v341_v7, %v333_v47  ;;  %v310_v27 = vsel %vm304_vm3, %v301_v38, %v297_v33  ;;  %v318_v46 = vmul.f32 5.0, %v272_v3 }
  0x65   : > { %412 = vst [vmem:[%s1088_s24 + $0x18] sm:$0xff] %v404_v9  ;;  %v326_v28 = vmul.f32 -20.0, %v255_v2  ;;  %v389_v29 = vadd.f32 %v381_v48, %v373_v10  ;;  %v342_v50 = vmul.f32 15.0, %v1031_v18  ;;  %v358_v51 = vmul.f32 -15.0, %v1031_v18 }
  0x66   : > { %v366_v52 = vmul.f32 20.0, %v293_v12  ;;  %v382_v32 = vmul.f32 -5.0, %v310_v27  ;;  %vm398_vm9 = vcmp.ge.f32.partialorder %v240_v11, 0.0  ;;  %v256_v13 = vsel %vm253_vm0, %v245_v53, %v249_v54 }
  0x67   : > { %v334_v31 = vadd.f32 %v326_v28, %v318_v46  ;;  %v405_v33 = vsel %vm397_vm8, %v349_v25, %v389_v29  ;;  %v273_v18 = vsel %vm270_vm1, %v264_v55, %v268_v57  ;;  %v294_v60 = vsel %vm287_vm2, %v285_v59, %v281_v58 }
  0x68   : > { %v374_v38 = vadd.f32 %v366_v52, %v358_v51  ;;  %413 = vst [vmem:[%s1088_s24 + $0x20] sm:$0xff] %v405_v33  ;;  %v311_v54 = vsel %vm304_vm3, %v302_v0, %v298_v63  ;;  %v319_v62 = vmul.f32 5.0, %v273_v18  ;;  %v327_v14 = vmul.f32 -20.0, %v256_v13 }
  0x69   : > { %v350_v53 = vadd.f32 %v342_v50, %v334_v31  ;;  %v343_v57 = vmul.f32 15.0, %v1076_v44  ;;  %v359_v15 = vmul.f32 -15.0, %v1076_v44  ;;  %v367_v16 = vmul.f32 20.0, %v294_v60 }
  0x6a   : > { %v390_v55 = vadd.f32 %v382_v32, %v374_v38  ;;  %v335_v58 = vadd.f32 %v327_v14, %v319_v62  ;;  %v383_v43 = vmul.f32 -5.0, %v311_v54  ;;  %vm399_vm10 = vcmp.ge.f32.partialorder %v241_v56, 0.0 }
  0x6b   : > { %v257_v59 = vsel %vm253_vm0, %v246_v30, %v250_v35  ;;  %v375_v0 = vadd.f32 %v367_v16, %v359_v15  ;;  %v274_v44 = vsel %vm270_vm1, %v265_v36, %v269_v37  ;;  %v295_v17 = vsel %vm287_vm2, %v286_v41, %v282_v40  ;;  %v242_v37 = vld [vmem:[%s986_s20 + $0x38] sm:$0xff] }
  0x6c   : > { %v406_v63 = vsel %vm398_vm9, %v350_v53, %v390_v55  ;;  %v351_v20 = vadd.f32 %v343_v57, %v335_v58  ;;  %v312_v30 = vsel %vm304_vm3, %v303_v49, %v299_v42  ;;  %v320_v35 = vmul.f32 5.0, %v274_v44 }
  0x6d   : > { %414 = vst [vmem:[%s1088_s24 + $0x28] sm:$0xff] %v406_v63  ;;  %v328_v21 = vmul.f32 -20.0, %v257_v59  ;;  %v391_v36 = vadd.f32 %v383_v43, %v375_v0  ;;  %v344_v22 = vmul.f32 15.0, %v1123_v19  ;;  %v360_v40 = vmul.f32 -15.0, %v1123_v19 }
  0x6e   : > { %v368_v41 = vmul.f32 20.0, %v295_v17  ;;  %v384_v23 = vmul.f32 -5.0, %v312_v30  ;;  %vm400_vm11 = vcmp.ge.f32.partialorder %v242_v37, 0.0 }
  0x6f   : > { %v336_v8 = vadd.f32 %v328_v21, %v320_v35  ;;  %v407_v1 = vsel %vm399_vm10, %v351_v20, %v391_v36 }
  0x70   : > { %v376_v42 = vadd.f32 %v368_v41, %v360_v40  ;;  %415 = vst [vmem:[%s1088_s24 + $0x30] sm:$0xff] %v407_v1 }
  0x71   : > { %v352_v49 = vadd.f32 %v344_v22, %v336_v8 }
  0x72   : > { %v392_v61 = vadd.f32 %v384_v23, %v376_v42 }
  0x74   : > { %v408_v19 = vsel %vm400_vm11, %v352_v49, %v392_v61 }
  0x75   : > { %416 = vst [vmem:[%s1088_s24 + $0x38] sm:$0xff] %v408_v19 }
  0x76   : > { %729 = shalt.err (!%p726_p6)
}
  0x77   : > { %s730_s3 = scalar_lea.hbm %s1295_s23, 1024  ;;  %s734_s15 = scalar_lea.hbm %s1351_s2, 4096 }
  0x78   : > { %p731_p3 = scmp.ne.s32.totalorder %s1295_s23, %s730_s3  ;;  %p735_p10 = scmp.lt.s32.totalorder %s1295_s23, %s1351_s2 }
  0x79   : > { %p736_p11 = scmp.lt.s32.totalorder %s734_s15, %s730_s3 }
  0x7a   : > { %p732_p7 = pnand %p731_p3, %p907_p9 }
  0x7b   : > { %p737_p8 = por %p736_p11, %p735_p10 }
  0x7c   : > { %p733_p1 = pneg %p732_p7 }
  0x7e   : > { %p738_p0 = pnand %p737_p8, %p733_p1 }
  0x80   : > { %741 = shalt.err (!%p738_p0)
}
  0x81   : > { %s824_s24 = smov 512   ;;  %s825_s18 = smov 1024  }
  0x82   : > { %s826_s27 = smov 32  }
  0x83   : > { %575 = dma.vmem_to_hbm [thread:$0]  (%p907_p9), %s1289_s13, 1024, %s1295_s23, %s418_s5, %s824_s24, %s825_s18, %s826_s27  }
  0x84 PF: > { %p589_p2 = scmp.ge.s32.totalorder %s816_s16, 2  ;;  %s448_s12 = sand.u32 1, %s788_s9  }
  0x85   : > { %s449_s8 = scalar_lea.sflag [#allocation4], %s448_s12 }
  0x86   : > { %p585_p13 = pnand %p589_p2, %p913_p12 }
  0x88   : > { %p586_p4 = pneg %p585_p13 }
  0x8a   : > { %783 = dma.done.wait (%p586_p4), %s449_s8, 1024  }
  0x8b   : > { %785 = vsyncadd (%p586_p4), %s449_s8, 4294966272  ;;  %s21_s16 = sadd.s32 1, %s816_s16   ;;  %s1368_s13 = sld [smem:[#allocation11_spill]] }
  0x8c   : > { %p18_p5 = scmp.ge.s32.totalorder %s21_s16, 6   ;;  %s1369_s25 = sld [smem:[#allocation12_spill]] }
  0x8d   : > { %s1370_s15 = sld [smem:[#allocation13_spill]]  ;;  %s1371_s9 = smov %s792_s10 }
  0x8e   : > { %s1372_s10 = smov %s796_s11  ;;  %s1373_s11 = smov %s922_s30 }
  0x8f   : > { %s1374_s12 = smov %s808_s14  ;;  %20 = sbr.rel (!%p18_p5) target bundleno = 11 (0xb), region = 86 }
  0x92   : > { %s1375_s14 = smov %s1369_s25 }
  0x94   :  { %454 = vsyncpa [#allocation3], 1 }
  0x95   :  { %456 = vsyncpa [#allocation3 + $0x1], 1 }
  0x96   :  { %457 = vsyncpa [#allocation6], 1 }
  0x97   :  { %459 = vsyncpa [#allocation6 + $0x1], 1 }
  0x98   :  { %460 = vsyncpa [#allocation4], 1 }
  0x99   :  { %462 = vsyncpa [#allocation4 + $0x1], 1 }

</bundles_post_ra>
